<compile_context>
chip_gen: v7x
topology: tpu7x:2x2x1
jax: 0.10.0
libtpu: 0.0.40
codegen_flags: <defaults>
</compile_context>

<pallas_src>
import functools

import jax
import jax.numpy as jnp
from jax.experimental import pallas as pl
from jax.experimental.pallas import tpu as pltpu

_LANES = 128


def _round_up(x, m):
    return -(-x // m) * m


def _dice_partial_kernel(x_ref, t_ref, out_ref, *, hw, tile_p, num_classes, ignore):
    i = pl.program_id(1)

    @pl.when(i == 0)
    def _():
        out_ref[...] = jnp.zeros_like(out_ref)

    x = x_ref[...].astype(jnp.float32)   # (C, TP) logits for one sample-tile
    t = t_ref[...]                        # (1, TP) int32 labels

    # Mask pixels past the end of the image plane (partial last tile); the
    # compare is against a static total so no input padding is ever needed.
    pix = i * tile_p + jax.lax.broadcasted_iota(jnp.int32, (1, tile_p), 1)
    valid = pix < hw

    # Numerically stable softmax numerators over the class (sublane) axis.
    m = jnp.max(x, axis=0, keepdims=True)            # (1, TP)
    e = jnp.exp(x - m)                                # (C, TP)
    denom = jnp.sum(e, axis=0, keepdims=True)         # (1, TP)
    inv = 1.0 / denom

    # one_hot(target) == (class_iota == label); ignore pixels map to class 0,
    # exactly matching `target[target == ignore] = 0` in the torch code.
    t0 = jnp.where(t == ignore, 0, t)                 # (1, TP)
    cls = jax.lax.broadcasted_iota(jnp.int32, (num_classes, tile_p), 0)
    inter_num = jnp.sum(jnp.where(cls == t0, e, 0.0), axis=0, keepdims=True)
    sq_num = jnp.sum(e * e, axis=0, keepdims=True)

    inter = inter_num * inv                           # prob of the target class
    a_part = sq_num * (inv * inv)                     # sum_c softmax^2

    out_ref[0:1, :] += jnp.where(valid, inter, 0.0)
    out_ref[1:2, :] += jnp.where(valid, a_part, 0.0)


@functools.partial(jax.jit, static_argnames=("ignore", "smooth", "tile_lanes"))
def dice_loss(pred, target, *, ignore=255, smooth=1e-4, tile_lanes=8192):
    """DiceLoss.forward: pred (N, C, H, W) logits, target (N, H, W) int labels."""
    n, c, h, w = pred.shape
    hw = h * w

    # Zero-cost layout changes only (no transpose / pad / dtype copies in HBM).
    x = pred.reshape(n, c, hw)
    t = target.reshape(n, 1, hw).astype(jnp.int32)

    tp = min(_round_up(hw, _LANES), _round_up(tile_lanes, _LANES))
    n_tiles = pl.cdiv(hw, tp)

    kernel = functools.partial(
        _dice_partial_kernel, hw=hw, tile_p=tp, num_classes=c, ignore=ignore)

    partials = pl.pallas_call(
        kernel,
        out_shape=jax.ShapeDtypeStruct((n, 2, tp), jnp.float32),
        grid_spec=pltpu.PrefetchScalarGridSpec(
            num_scalar_prefetch=0,
            grid=(n, n_tiles),
            in_specs=[
                pl.BlockSpec((None, c, tp), lambda b, i: (b, 0, i)),
                pl.BlockSpec((None, 1, tp), lambda b, i: (b, 0, i)),
            ],
            out_specs=pl.BlockSpec((None, 2, tp), lambda b, i: (b, 0, 0)),
        ),
        compiler_params=pltpu.CompilerParams(
            dimension_semantics=("parallel", "arbitrary")),
    )(x, t)

    intersection = jnp.sum(partials[:, 0, :])
    a_sum = jnp.sum(partials[:, 1, :])
    b_sum = jnp.float32(n * hw)   # sum(one_hot^2) == number of pixels, exactly
    return 1.0 - (2.0 * intersection + smooth) / (a_sum + b_sum + smooth)


def log_cosh_dice_loss(output, target, *, num_classes=19, ignore=255, smooth=1e-4):
    """LogCoshDiceLoss.forward (num_classes is inferred from the logits' C dim)."""
    del num_classes  # C is taken from the tensors, matching F.one_hot(C) usage
    if not isinstance(output, (list, tuple)):
        output = [output]
    balance_weights = [0.4, 1.0]
    sb_weights = 1.0
    if len(balance_weights) == len(output):
        l0 = balance_weights[0] * dice_loss(output[0], target, ignore=ignore, smooth=smooth)
        l1 = balance_weights[1] * dice_loss(output[1], target, ignore=ignore, smooth=smooth)
        return l0 + l1
    return sb_weights * dice_loss(output[0], target, ignore=ignore, smooth=smooth)


# ----------------------- pure-JAX reference for checking ----------------------
def _dice_ref(pred, target, num_classes, ignore=255, smooth=1e-4):
    p = jax.nn.softmax(pred.astype(jnp.float32), axis=1)
    t = jnp.where(target == ignore, 0, target)
    gt = jax.nn.one_hot(t, num_classes, dtype=jnp.float32)       # (N, H, W, C)
    gt = jnp.transpose(gt, (0, 3, 1, 2))                          # (N, C, H, W)
    iflat = p.reshape(-1)
    tflat = gt.reshape(-1)
    inter = jnp.sum(iflat * tflat)
    a = jnp.sum(iflat * iflat)
    b = jnp.sum(tflat * tflat)
    return 1.0 - (2.0 * inter + smooth) / (a + b + smooth)


def _reference_loss(outputs, target, num_classes):
    bw = [0.4, 1.0]
    return (bw[0] * _dice_ref(outputs[0], target, num_classes)
            + bw[1] * _dice_ref(outputs[1], target, num_classes))


if __name__ == "__main__":
    key = jax.random.PRNGKey(0)
    k1, k2, k3, k4 = jax.random.split(key, 4)

    n, c, h, w = 2, 19, 16, 16
    out0 = jax.random.normal(k1, (n, c, h, w), dtype=jnp.float32)   # aux logits
    out1 = jax.random.normal(k2, (n, c, h, w), dtype=jnp.float32)   # main logits
    labels = jax.random.randint(k3, (n, h, w), 0, c, dtype=jnp.int32)
    labels = jnp.where(jax.random.uniform(k4, (n, h, w)) < 0.1, 255, labels)

    loss = log_cosh_dice_loss([out0, out1], labels, num_classes=c)
    loss = jax.block_until_ready(loss)

    ref = jax.block_until_ready(_reference_loss([out0, out1], labels, c))
    assert jnp.allclose(loss, ref, rtol=1e-5, atol=1e-5), (loss, ref)

    print("KERNEL_OK")
</pallas_src>

<mosaic_0001>
module attributes {stable_mosaic.version = 11 : i64} {
  func.func @_dice_partial_kernel(%arg0: i32, %arg1: i32, %arg2: memref<1x19x256xf32, #tpu.memory_space<vmem>>, %arg3: memref<1x1x256xi32, #tpu.memory_space<vmem>>, %arg4: memref<1x2x256xf32, #tpu.memory_space<vmem>>) attributes {dimension_semantics = [#tpu.dimension_semantics<parallel>, #tpu.dimension_semantics<arbitrary>], iteration_bounds = array<i64: 2, 1>, scalar_prefetch = 0 : i64, scratch_operands = 0 : i64, tpu.core_type = #tpu.core_type<tc>, window_params = [{transform_indices = @transform_0, window_bounds = array<i64: 1, 19, 256>}, {transform_indices = @transform_1, window_bounds = array<i64: 1, 1, 256>}, {transform_indices = @transform_2, window_bounds = array<i64: 1, 2, 256>}]} {
    %c0_i32 = arith.constant 0 : i32
    %0 = arith.cmpi eq, %arg1, %c0_i32 : i32
    %1 = arith.extui %0 : i1 to i32
    %c0_i32_0 = arith.constant 0 : i32
    %2 = arith.cmpi ne, %1, %c0_i32_0 : i32
    scf.if %2 {
      %cst_26 = arith.constant 0.000000e+00 : f32
      %55 = vector.broadcast %cst_26 : f32 to vector<2x256xf32>
      %c0_27 = arith.constant 0 : index
      %c0_28 = arith.constant 0 : index
      %c0_29 = arith.constant 0 : index
      %56 = vector.load %arg4[%c0_27, %c0_28, %c0_29] : memref<1x2x256xf32, #tpu.memory_space<vmem>>, vector<1x2x256xf32>
      %57 = vector.shape_cast %56 : vector<1x2x256xf32> to vector<2x256xf32>
      %58 = vector.shape_cast %55 : vector<2x256xf32> to vector<1x2x256xf32>
      tpu.vector_store %arg4[%c0_27, %c0_28, %c0_29], %58 {strides = array<i32>} : memref<1x2x256xf32, #tpu.memory_space<vmem>>, vector<1x2x256xf32>,
    } else {
    }
    %c0 = arith.constant 0 : index
    %c0_1 = arith.constant 0 : index
    %c0_2 = arith.constant 0 : index
    %3 = vector.load %arg2[%c0, %c0_1, %c0_2] : memref<1x19x256xf32, #tpu.memory_space<vmem>>, vector<1x19x256xf32>
    %4 = vector.shape_cast %3 : vector<1x19x256xf32> to vector<19x256xf32>
    %c0_3 = arith.constant 0 : index
    %c0_4 = arith.constant 0 : index
    %c0_5 = arith.constant 0 : index
    %5 = vector.load %arg3[%c0_3, %c0_4, %c0_5] : memref<1x1x256xi32, #tpu.memory_space<vmem>>, vector<1x1x256xi32>
    %6 = vector.shape_cast %5 : vector<1x1x256xi32> to vector<1x256xi32>
    %c256_i32 = arith.constant 256 : i32
    %7 = arith.muli %arg1, %c256_i32 : i32
    %8 = tpu.iota {dimensions = array<i32: 1>} : vector<1x256xi32>
    %9 = vector.broadcast %7 : i32 to vector<1x256xi32>
    %10 = arith.addi %9, %8 : vector<1x256xi32>
    %c256_i32_6 = arith.constant 256 : i32
    %11 = vector.broadcast %c256_i32_6 : i32 to vector<1x256xi32>
    %12 = arith.cmpi slt, %10, %11 : vector<1x256xi32>
    %cst = arith.constant dense<0xFF800000> : vector<256xf32>
    %13 = vector.multi_reduction <maximumf>, %4, %cst [0] : vector<19x256xf32> to vector<256xf32>
    %14 = vector.shape_cast %13 : vector<256xf32> to vector<1x256xf32>
    %15 = vector.broadcast %14 : vector<1x256xf32> to vector<19x256xf32>
    %16 = arith.subf %4, %15 : vector<19x256xf32>
    %17 = math.exp %16 : vector<19x256xf32>
    %cst_7 = arith.constant dense<0.000000e+00> : vector<256xf32>
    %18 = vector.multi_reduction <add>, %17, %cst_7 [0] : vector<19x256xf32> to vector<256xf32>
    %19 = vector.shape_cast %18 : vector<256xf32> to vector<1x256xf32>
    %cst_8 = arith.constant 1.000000e+00 : f32
    %20 = vector.broadcast %cst_8 : f32 to vector<1x256xf32>
    %21 = arith.divf %20, %19 : vector<1x256xf32>
    %c255_i32 = arith.constant 255 : i32
    %22 = vector.broadcast %c255_i32 : i32 to vector<1x256xi32>
    %23 = arith.cmpi eq, %6, %22 : vector<1x256xi32>
    %c0_i32_9 = arith.constant 0 : i32
    %24 = vector.broadcast %c0_i32_9 : i32 to vector<1x256xi32>
    %25 = arith.select %23, %24, %6 : vector<1x256xi1>, vector<1x256xi32>
    %26 = tpu.iota {dimensions = array<i32: 0>} : vector<19x256xi32>
    %27 = vector.broadcast %25 : vector<1x256xi32> to vector<19x256xi32>
    %28 = arith.cmpi eq, %26, %27 : vector<19x256xi32>
    %cst_10 = arith.constant 0.000000e+00 : f32
    %29 = vector.broadcast %cst_10 : f32 to vector<19x256xf32>
    %30 = arith.select %28, %17, %29 : vector<19x256xi1>, vector<19x256xf32>
    %cst_11 = arith.constant dense<0.000000e+00> : vector<256xf32>
    %31 = vector.multi_reduction <add>, %30, %cst_11 [0] : vector<19x256xf32> to vector<256xf32>
    %32 = vector.shape_cast %31 : vector<256xf32> to vector<1x256xf32>
    %33 = arith.mulf %17, %17 : vector<19x256xf32>
    %cst_12 = arith.constant dense<0.000000e+00> : vector<256xf32>
    %34 = vector.multi_reduction <add>, %33, %cst_12 [0] : vector<19x256xf32> to vector<256xf32>
    %35 = vector.shape_cast %34 : vector<256xf32> to vector<1x256xf32>
    %36 = arith.mulf %32, %21 : vector<1x256xf32>
    %37 = arith.mulf %21, %21 : vector<1x256xf32>
    %38 = arith.mulf %35, %37 : vector<1x256xf32>
    %c0_13 = arith.constant 0 : index
    %c0_14 = arith.constant 0 : index
    %c0_15 = arith.constant 0 : index
    %39 = vector.load %arg4[%c0_13, %c0_14, %c0_15] : memref<1x2x256xf32, #tpu.memory_space<vmem>>, vector<1x1x256xf32>
    %40 = vector.shape_cast %39 : vector<1x1x256xf32> to vector<1x256xf32>
    %cst_16 = arith.constant 0.000000e+00 : f32
    %41 = vector.broadcast %cst_16 : f32 to vector<1x256xf32>
    %42 = arith.select %12, %36, %41 : vector<1x256xi1>, vector<1x256xf32>
    %43 = arith.addf %40, %42 : vector<1x256xf32>
    %c0_17 = arith.constant 0 : index
    %c0_18 = arith.constant 0 : index
    %c0_19 = arith.constant 0 : index
    %44 = vector.load %arg4[%c0_17, %c0_18, %c0_19] : memref<1x2x256xf32, #tpu.memory_space<vmem>>, vector<1x1x256xf32>
    %45 = vector.shape_cast %44 : vector<1x1x256xf32> to vector<1x256xf32>
    %46 = vector.shape_cast %43 : vector<1x256xf32> to vector<1x1x256xf32>
    tpu.vector_store %arg4[%c0_17, %c0_18, %c0_19], %46 {strides = array<i32>} : memref<1x2x256xf32, #tpu.memory_space<vmem>>, vector<1x1x256xf32>,
    %c0_20 = arith.constant 0 : index
    %c1 = arith.constant 1 : index
    %c0_21 = arith.constant 0 : index
    %47 = vector.load %arg4[%c0_20, %c1, %c0_21] : memref<1x2x256xf32, #tpu.memory_space<vmem>>, vector<1x1x256xf32>
    %48 = vector.shape_cast %47 : vector<1x1x256xf32> to vector<1x256xf32>
    %cst_22 = arith.constant 0.000000e+00 : f32
    %49 = vector.broadcast %cst_22 : f32 to vector<1x256xf32>
    %50 = arith.select %12, %38, %49 : vector<1x256xi1>, vector<1x256xf32>
    %51 = arith.addf %48, %50 : vector<1x256xf32>
    %c0_23 = arith.constant 0 : index
    %c1_24 = arith.constant 1 : index
    %c0_25 = arith.constant 0 : index
    %52 = vector.load %arg4[%c0_23, %c1_24, %c0_25] : memref<1x2x256xf32, #tpu.memory_space<vmem>>, vector<1x1x256xf32>
    %53 = vector.shape_cast %52 : vector<1x1x256xf32> to vector<1x256xf32>
    %54 = vector.shape_cast %51 : vector<1x256xf32> to vector<1x1x256xf32>
    tpu.vector_store %arg4[%c0_23, %c1_24, %c0_25], %54 {strides = array<i32>} : memref<1x2x256xf32, #tpu.memory_space<vmem>>, vector<1x1x256xf32>,
    return
  }
  func.func @transform_0(%arg0: i32, %arg1: i32) -> (i32, i32, i32) {
    %c0_i32 = arith.constant 0 : i32
    %c0_i32_0 = arith.constant 0 : i32
    return %arg0, %c0_i32, %arg1 : i32, i32, i32
  }
  func.func @transform_1(%arg0: i32, %arg1: i32) -> (i32, i32, i32) {
    %c0_i32 = arith.constant 0 : i32
    %c0_i32_0 = arith.constant 0 : i32
    return %arg0, %c0_i32, %arg1 : i32, i32, i32
  }
  func.func @transform_2(%arg0: i32, %arg1: i32) -> (i32, i32, i32) {
    %c0_i32 = arith.constant 0 : i32
    %c0_i32_0 = arith.constant 0 : i32
    %c0_i32_1 = arith.constant 0 : i32
    return %arg0, %c0_i32, %c0_i32_0 : i32, i32, i32
  }
}

</mosaic_0001>

<bundles_post_ra>
// kernel: dice_loss.1
= control target key start
LH: loop header
LB: loop body
LE: loop exit
PB: predicated region body
PF: predicated region fallthrough
CT: control target
= control target key end

     0   :  { %s592_s9 = smov 0   ;;  %s594_s10 = smov 0   ;;  %s661_s0 = inlined_call_operand.vmem [shape: f32[2,19,256], index: 0, kind: input, shape index: {}]   ;;  %s662_s1 = inlined_call_operand.vmem [shape: s32[2,1,256], index: 1, kind: input, shape index: {}]   ;;  %s663_s2 = inlined_call_operand.vmem [shape: f32[2,2,256], index: 2, kind: output, shape index: {}]  }
   0x1   :  { %s596_s11 = smov 0  }
   0x2 LB: > { %s24_s12 = sadd.s32 1, %s569_s10  ;;  %p498_p0 = scmp.ge.s32.totalorder %s573_s11, 1  ;;  %s573_s11 = sphi %s596_s11, %s12_s11   ;;  %s569_s10 = sphi %s594_s10, %s665_s10   ;;  %s565_s9 = sphi %s592_s9, %s664_s9  }
   0x3   : > { %p26_p1 = scmp.ge.s32.totalorder %s24_s12, 2  ;;  %p147_p2 = scmp.lt.s32.totalorder %s573_s11, 3 }
   0x5   : > { %s667_s12 = smov (%p26_p1, %s24_s12), 0  ;;  %p148_p3 = pnand %p498_p0, %p147_p2 }
   0x6   : > { %p182_p4 = scmp.lt.s32.totalorder (!%p148_p3), %s565_s9, 1  ;;  %vm226_vm0 = vcmask (!%p148_p3), 1042432   ;;  %v575_v0 = vmov (!%p148_p3), 0.0   ;;  %v287_v21 = vlaneseq (!%p148_p3) }
   0x7   : > { %151 = sbr.rel (%p148_p3) target bundleno = 96 (0x60), region = 28 }
   0x8   : > { %v630_v27 = vshrl.u32 (!%p148_p3), %v287_v21, 7  ;;  %vm383_vm8 = vcmp.lt.s32.totalorder (!%p148_p3), %v287_v21, 256 }
   0xa   : > { %v293_v39 = vsub.s32 (!%p148_p3), 0, %v630_v27  ;;  %v297_v42 = vsub.s32 (!%p148_p3), 1, %v630_v27  ;;  %v289_v45 = vadd.s32 (!%p148_p3), 8, %v630_v27  ;;  %v290_v46 = vadd.s32 (!%p148_p3), 16, %v630_v27 }
   0xe   : > { %s669_s9 = smov (!%p182_p4, %s565_s9), 1 }
   0xf   : > { %s508_s13 = smul.u32 48, %s669_s9  ;;  %s507_s14 = sshll.u32 %s669_s9, 2 }
  0x10   : > { %s620_s20 = scalar_lea.vmem %s663_s2, %s507_s14  ;;  %s500_s21 = sshll.u32 %s669_s9, 1 }
  0x11   : > { %s189_s17 = scalar_lea.vmem %s661_s0, %s508_s13  ;;  %209 = vst [vmem:[%s620_s20] sm:$0xf] %v575_v0  ;;  %s198_s24 = scalar_lea.vmem %s662_s1, %s500_s21 }
  0x12   : > { %v210_v1 = vld [vmem:[%s189_s17] sm:$0xff]  ;;  %v211_v2 = vld [vmem:[%s189_s17 + $0x8] sm:$0xff]  ;;  %v212_v5 = vld [vmem:[%s189_s17 + $0x10] sm:$0xff] }
  0x13   : > { %v214_v3 = vld [vmem:[%s189_s17 + $0x20] sm:$0x7]  ;;  %v215_v4 = vld [vmem:[%s189_s17 + $0x28] sm:$0x7]  ;;  %v213_v6 = vld [vmem:[%s189_s17 + $0x18] sm:$0xff] }
  0x14   : > { %v227_v7 = vsel %vm226_vm0, %v214_v3, -inf  ;;  %v236_v8 = vsel %vm226_vm0, %v215_v4, -inf  ;;  %v216_v24 = vld [vmem:[%s198_s24] sm:$0x3] }
  0x15   : > { %v228_v9 = vmax.f32 %v210_v1, %v227_v7  ;;  %v237_v10 = vmax.f32 %v211_v2, %v236_v8  ;;  %vm285_vm1 = vcmp.eq.s32.totalorder %v216_v24, 255 }
  0x16   : > { %v286_v41 = vsel %vm285_vm1, 0, %v216_v24 }
  0x17   : > { %v229_v11 = vmax.f32 %v228_v9, %v212_v5  ;;  %v238_v12 = vmax.f32 %v237_v10, %v213_v6  ;;  %v294_v43 = vrot.slane %v286_v41, %v293_v39  ;;  %v298_v44 = vrot.slane %v286_v41, %v297_v42 }
  0x19   : > { %v230_v13 = vrot.slane %v229_v11, 4  ;;  %v239_v14 = vrot.slane %v238_v12, 4  ;;  %vm299_vm2 = vcmp.eq.s32.totalorder %v630_v27, %v294_v43  ;;  %vm300_vm3 = vcmp.eq.s32.totalorder %v630_v27, %v298_v44 }
  0x1a   : > { %vm301_vm4 = vcmp.eq.s32.totalorder %v289_v45, %v294_v43  ;;  %vm302_vm5 = vcmp.eq.s32.totalorder %v289_v45, %v298_v44  ;;  %vm303_vm6 = vcmp.eq.s32.totalorder %v290_v46, %v294_v43  ;;  %vm304_vm7 = vcmp.eq.s32.totalorder %v290_v46, %v298_v44 }
  0x1b   : > { %v231_v15 = vmax.f32 %v229_v11, %v230_v13  ;;  %v240_v16 = vmax.f32 %v238_v12, %v239_v14 }
  0x1d   : > { %v232_v17 = vrot.slane %v231_v15, 2  ;;  %v241_v18 = vrot.slane %v240_v16, 2 }
  0x1f   : > { %v233_v19 = vmax.f32 %v231_v15, %v232_v17  ;;  %v242_v20 = vmax.f32 %v240_v16, %v241_v18 }
  0x21   : > { %v234_v22 = vrot.slane %v233_v19, 1  ;;  %v243_v23 = vrot.slane %v242_v20, 1 }
  0x23   : > { %v235_v25 = vmax.f32 %v233_v19, %v234_v22  ;;  %v244_v26 = vmax.f32 %v242_v20, %v243_v23 }
  0x25   : > { %v245_v28 = vsub.f32 %v210_v1, %v235_v25  ;;  %v246_v29 = vsub.f32 %v211_v2, %v244_v26  ;;  %v247_v30 = vsub.f32 %v212_v5, %v235_v25  ;;  %v248_v31 = vsub.f32 %v213_v6, %v244_v26 }
  0x26   : > { %v249_v32 = vsub.f32 %v214_v3, %v235_v25  ;;  %v250_v33 = vsub.f32 %v215_v4, %v244_v26 }
  0x27   : > { %v251_v34 = vmul.f32 1.442695, %v245_v28  ;;  %v253_v35 = vmul.f32 1.442695, %v246_v29  ;;  %v255_v36 = vmul.f32 1.442695, %v247_v30 }
  0x28   : > { %v257_v37 = vmul.f32 1.442695, %v248_v31  ;;  %v259_v38 = vmul.f32 1.442695, %v249_v32  ;;  %v261_v40 = vmul.f32 1.442695, %v250_v33 }
  0x29   : > { %535 = vpow2.f32 %v251_v34 }
  0x2a   : > { %537 = vpow2.f32 %v253_v35 }
  0x2b   : > { %539 = vpow2.f32 %v255_v36 }
  0x2c   : > { %541 = vpow2.f32 %v257_v37 }
  0x2d   : > { %543 = vpow2.f32 %v259_v38 }
  0x2e   : > { %545 = vpow2.f32 %v261_v40 }
  0x33   : > { %v536_v47 = vpop.eup %535 }
  0x34   : > { %v538_v48 = vpop.eup %537  ;;  %v305_v49 = vsel %vm299_vm2, %v536_v47, 0.0  ;;  %v329_v52 = vmul.f32 %v536_v47, %v536_v47 }
  0x35   : > { %v540_v50 = vpop.eup %539  ;;  %v306_v51 = vsel %vm300_vm3, %v538_v48, 0.0  ;;  %v330_v56 = vmul.f32 %v538_v48, %v538_v48 }
  0x36   : > { %v542_v53 = vpop.eup %541  ;;  %v263_v54 = vadd.f32 %v540_v50, %v536_v47  ;;  %v307_v55 = vsel %vm301_vm4, %v540_v50, 0.0  ;;  %v331_v57 = vmul.f32 %v540_v50, %v540_v50 }
  0x37   : > { %v544_v58 = vpop.eup %543  ;;  %v272_v59 = vadd.f32 %v542_v53, %v538_v48  ;;  %v308_v60 = vsel %vm302_vm5, %v542_v53, 0.0  ;;  %v311_v61 = vadd.f32 %v307_v55, %v305_v49  ;;  %v332_v62 = vmul.f32 %v542_v53, %v542_v53 }
  0x38   : > { %v546_v63 = vpop.eup %545  ;;  %v264_v0 = vsel %vm226_vm0, %v544_v58, 0.0  ;;  %v309_v1 = vsel %vm303_vm6, %v544_v58, 0.0  ;;  %v320_v2 = vadd.f32 %v308_v60, %v306_v51  ;;  %v333_v3 = vmul.f32 %v544_v58, %v544_v58 }
  0x39   : > { %v265_v4 = vadd.f32 %v264_v0, %v263_v54  ;;  %v273_v5 = vsel %vm226_vm0, %v546_v63, 0.0  ;;  %v310_v6 = vsel %vm304_vm7, %v546_v63, 0.0  ;;  %v312_v7 = vsel %vm226_vm0, %v309_v1, 0.0 }
  0x3a   : > { %v274_v8 = vadd.f32 %v273_v5, %v272_v59  ;;  %v313_v9 = vadd.f32 %v312_v7, %v311_v61  ;;  %v321_v10 = vsel %vm226_vm0, %v310_v6, 0.0  ;;  %v334_v11 = vmul.f32 %v546_v63, %v546_v63 }
  0x3b   : > { %v266_v12 = vrot.slane %v265_v4, 4  ;;  %v322_v13 = vadd.f32 %v321_v10, %v320_v2  ;;  %v335_v14 = vadd.f32 %v331_v57, %v329_v52  ;;  %v336_v15 = vsel %vm226_vm0, %v333_v3, 0.0 }
  0x3c   : > { %v275_v16 = vrot.slane %v274_v8, 4  ;;  %v314_v17 = vrot.slane %v313_v9, 4  ;;  %v344_v18 = vadd.f32 %v332_v62, %v330_v56  ;;  %v345_v19 = vsel %vm226_vm0, %v334_v11, 0.0  ;;  %v503_v11 = vld [vmem:[%s620_s20 + $0x1] ss:$2 sm:$0x3] }
  0x3d   : > { %v267_v20 = vadd.f32 %v266_v12, %v265_v4  ;;  %v323_v22 = vrot.slane %v322_v13, 4  ;;  %v337_v23 = vadd.f32 %v336_v15, %v335_v14  ;;  %v576_v51 = vmov 1966171168  }
  0x3e   : > { %v276_v24 = vadd.f32 %v275_v16, %v274_v8  ;;  %v315_v25 = vadd.f32 %v314_v17, %v313_v9  ;;  %v346_v26 = vadd.f32 %v345_v19, %v344_v18  ;;  %v366_v52 = vunpack.c.l.s4 %v576_v51  ;;  %v359_v8 = vld [vmem:[%s620_s20] ss:$2 sm:$0x3] }
  0x3f   : > { %v268_v28 = vrot.slane %v267_v20, 2  ;;  %v324_v29 = vadd.f32 %v323_v22, %v322_v13  ;;  %v338_v30 = vrot.slane %v337_v23, 4 }
  0x40   : > { %v277_v31 = vrot.slane %v276_v24, 2  ;;  %v347_v32 = vrot.slane %v346_v26, 4  ;;  %v316_v36 = vrot.slane %v315_v25, 2  ;;  %v367_v57 = vunpack.c.0.s8 %v366_v52 }
  0x41   : > { %v269_v33 = vadd.f32 %v268_v28, %v267_v20  ;;  %v339_v34 = vadd.f32 %v338_v30, %v337_v23  ;;  %v325_v39 = vrot.slane %v324_v29, 2 }
  0x42   : > { %v278_v35 = vadd.f32 %v277_v31, %v276_v24  ;;  %v348_v37 = vadd.f32 %v347_v32, %v346_v26  ;;  %v317_v45 = vadd.f32 %v316_v36, %v315_v25  ;;  %v370_v1 = vsub.s32 %v367_v57, %v630_v27 }
  0x43   : > { %v270_v38 = vrot.slane %v269_v33, 1  ;;  %v340_v41 = vrot.slane %v339_v34, 2  ;;  %v326_v46 = vadd.f32 %v325_v39, %v324_v29 }
  0x44   : > { %v279_v40 = vrot.slane %v278_v35, 1  ;;  %v349_v43 = vrot.slane %v348_v37, 2  ;;  %v318_v49 = vrot.slane %v317_v45, 1 }
  0x45   : > { %v271_v42 = vadd.f32 %v270_v38, %v269_v33  ;;  %v341_v47 = vadd.f32 %v340_v41, %v339_v34  ;;  %v327_v50 = vrot.slane %v326_v46, 1 }
  0x46   : > { %v280_v44 = vadd.f32 %v279_v40, %v278_v35  ;;  %v350_v48 = vadd.f32 %v349_v43, %v348_v37  ;;  %v319_v55 = vadd.f32 %v318_v49, %v317_v45 }
  0x47   : > { %547 = vrcp.f32 %v271_v42  ;;  %v342_v53 = vrot.slane %v341_v47, 1  ;;  %v328_v56 = vadd.f32 %v327_v50, %v326_v46 }
  0x48   : > { %549 = vrcp.f32 %v280_v44  ;;  %v351_v54 = vrot.slane %v350_v48, 1 }
  0x49   : > { %v343_v58 = vadd.f32 %v342_v53, %v341_v47 }
  0x4a   : > { %v352_v60 = vadd.f32 %v351_v54, %v350_v48 }
  0x51   : > { %v548_v59 = vpop.eup %547 }
  0x52   : > { %v550_v61 = vpop.eup %549  ;;  %v353_v62 = vmul.f32 %v548_v59, %v319_v55  ;;  %v355_v63 = vmul.f32 %v548_v59, %v548_v59 }
  0x53   : > { %v354_v0 = vmul.f32 %v550_v61, %v328_v56  ;;  %v356_v2 = vmul.f32 %v550_v61, %v550_v61 }
  0x54   : > { %v357_v3 = vmul.f32 %v355_v63, %v343_v58 }
  0x55   : > { %v364_v4 = vcombine.low %v353_v62, %v354_v0  ;;  %v358_v5 = vmul.f32 %v356_v2, %v352_v60 }
  0x57   : > { %v371_v6 = vrot.slane %v364_v4, %v370_v1  ;;  %v392_v7 = vcombine.low %v357_v3, %v358_v5 }
  0x59   : > { %v378_v9 = vrot.slane %v371_v6, %v370_v1  ;;  %v399_v10 = vrot.slane %v392_v7, %v370_v1 }
  0x5b   : > { %v380_v12 = vadd.f32 %v378_v9, %v359_v8  ;;  %v406_v13 = vrot.slane %v399_v10, %v370_v1 }
  0x5d   : > { %385 = vst.msk [vmem:[%s620_s20] ss:$2 sm:$0x3] %vm383_vm8, %v380_v12  ;;  %v408_v14 = vadd.f32 %v503_v11, %v406_v13 }
  0x5f   : > { %504 = vst.msk [vmem:[%s620_s20 + $0x1] ss:$2 sm:$0x3] %vm383_vm8, %v408_v14 }
  0x60 PF: > { %s12_s11 = sadd.s32 1, %s573_s11   ;;  %s664_s9 = smov %s569_s10 }
  0x61   : > { %p9_p5 = scmp.ge.s32.totalorder %s12_s11, 4   ;;  %s665_s10 = smov %s667_s12 }
  0x63   :  { %11 = sbr.rel (!%p9_p5) target bundleno = 2 (0x2), region = 66 }

</bundles_post_ra>
